<compile_context>
chip_gen: v6e
topology: v6e:2x2x1
jax: 0.10.0
libtpu: 0.0.40
codegen_flags: <defaults>
</compile_context>

<pallas_src>
import functools

import jax
import jax.numpy as jnp
from jax.experimental import pallas as pl
from jax.experimental.pallas import tpu as pltpu

_LANE = 128      # lane width: pad feature dims to multiples of this
_SUBLANE = 8     # sublane granularity for the batch (row) dimension


def _round_up(x, m):
    return (x + m - 1) // m * m


def _pad2(a, rows, cols):
    r, c = a.shape
    return jnp.pad(a, ((0, rows - r), (0, cols - c)))


# ----------------------------------------------------------------------------
# Kernel: one batch tile per grid step, weights are full VMEM-resident blocks.
# ----------------------------------------------------------------------------
def dynamics_mlp_kernel(x_ref, w1_ref, b1_ref, w2_ref, b2_ref, w3_ref, b3_ref,
                        out_ref):
    cdt = w1_ref.dtype                    # compute dtype for MXU operands (bf16 or f32)

    x = x_ref[...].astype(cdt)            # (TILE_B, in_dim)

    # Layer 1: single lane-dense matmul (concat already done in the wrapper)
    h = jnp.dot(x, w1_ref[...], preferred_element_type=jnp.float32) + b1_ref[...]
    h = jnp.maximum(h, 0.0)               # f32 elementwise (VPU-safe on v5e too)

    # Layer 2
    h = jnp.dot(h.astype(cdt), w2_ref[...], preferred_element_type=jnp.float32) + b2_ref[...]
    h = jnp.maximum(h, 0.0)

    # Output layer (no activation, matching create_mlp)
    y = jnp.dot(h.astype(cdt), w3_ref[...], preferred_element_type=jnp.float32) + b3_ref[...]
    out_ref[...] = y.astype(out_ref.dtype)


# ----------------------------------------------------------------------------
# Wrapper
# ----------------------------------------------------------------------------
def dynamics_network_forward(obs, action, params, *,
                             compute_dtype=jnp.bfloat16, max_tile_b=512):
    """Pallas-backed forward of DynamicsNetwork: model(cat(obs, action, dim=1))."""
    w1, b1, w2, b2, w3, b3 = params
    in_dim, H = w1.shape
    out_dim = w3.shape[1]
    Hp = _round_up(H, _LANE)
    Op = _round_up(out_dim, _LANE)

    # --- layout plumbing in the wrapper: zero-pad feature dims to 128 lanes ---
    # Zero-padded hidden units produce ReLU(0) = 0 and contribute nothing to the
    # next layer, so numerics are exactly preserved.
    w1p = _pad2(w1, in_dim, Hp).astype(compute_dtype)
    w2p = _pad2(w2, Hp, Hp).astype(compute_dtype)
    w3p = _pad2(w3, Hp, Op).astype(compute_dtype)
    b1p = _pad2(b1.reshape(1, -1), 1, Hp).astype(jnp.float32)
    b2p = _pad2(b2.reshape(1, -1), 1, Hp).astype(jnp.float32)
    b3p = _pad2(b3.reshape(1, -1), 1, Op).astype(jnp.float32)

    # Concat in the wrapper (free: both inputs already pad to 128 lanes),
    # cast MXU operands to the compute dtype to halve activation DMA on v6e/v7x.
    combined = jnp.concatenate(
        [obs.astype(jnp.float32), action.astype(jnp.float32)], axis=1
    ).astype(compute_dtype)

    B = combined.shape[0]
    tile_b = min(max_tile_b, _round_up(B, _SUBLANE))
    b_pad = _round_up(B, tile_b)
    if b_pad != B:
        combined = jnp.pad(combined, ((0, b_pad - B), (0, 0)))
    grid = (b_pad // tile_b,)

    x_spec = pl.BlockSpec((tile_b, in_dim), lambda i: (i, 0))
    out_spec = pl.BlockSpec((tile_b, Op), lambda i: (i, 0))

    def full_spec(shape):
        return pl.BlockSpec(shape, lambda i: (0, 0))

    weight_args = (w1p, b1p, w2p, b2p, w3p, b3p)
    flops = 2 * b_pad * (in_dim * Hp + Hp * Hp + Hp * Op)
    bytes_accessed = (
        combined.size * combined.dtype.itemsize
        + sum(int(p.size) * p.dtype.itemsize for p in weight_args)
        + b_pad * Op * 4
    )

    out_padded = pl.pallas_call(
        dynamics_mlp_kernel,
        out_shape=jax.ShapeDtypeStruct((b_pad, Op), jnp.float32),
        grid_spec=pltpu.PrefetchScalarGridSpec(
            num_scalar_prefetch=0,
            grid=grid,
            in_specs=[x_spec] + [full_spec(p.shape) for p in weight_args],
            out_specs=out_spec,
        ),
        compiler_params=pltpu.CompilerParams(
            dimension_semantics=("parallel",),   # shard batch tiles across v7x's 2 TCs
        ),
        cost_estimate=pl.CostEstimate(
            flops=flops, transcendentals=0, bytes_accessed=bytes_accessed),
    )(combined, *weight_args)

    # Drop batch padding and the lane padding of the output features.
    return out_padded[:B, :out_dim]


# ----------------------------------------------------------------------------
# Synthetic parameters + pure-JAX reference
# ----------------------------------------------------------------------------
def init_params(key, obs_dim, act_dim, hidden, out_dim):
    """Shapes match create_mlp(obs_dim+act_dim, obs_dim, net_arch=[H, H], ReLU).
    Weights stored as (in_features, out_features) so y = x @ W + b."""
    k1, k2, k3 = jax.random.split(key, 3)
    in_dim = obs_dim + act_dim
    scale = 0.1
    w1 = scale * jax.random.normal(k1, (in_dim, hidden), jnp.float32)
    b1 = jnp.zeros((1, hidden), jnp.float32)
    w2 = scale * jax.random.normal(k2, (hidden, hidden), jnp.float32)
    b2 = jnp.zeros((1, hidden), jnp.float32)
    w3 = scale * jax.random.normal(k3, (hidden, out_dim), jnp.float32)
    b3 = jnp.zeros((1, out_dim), jnp.float32)
    return (w1, b1, w2, b2, w3, b3)


def reference_forward(obs, action, params):
    """Pure-JAX reference mirroring the PyTorch forward, for validation."""
    w1, b1, w2, b2, w3, b3 = params
    x = jnp.concatenate([obs, action], axis=1)
    h = jnp.maximum(x @ w1 + b1, 0.0)
    h = jnp.maximum(h @ w2 + b2, 0.0)
    return h @ w3 + b3


if __name__ == "__main__":
    # Small shapes consistent with the module's forward:
    #   obs: (batch, obs_dim), action: (batch, act_dim)
    batch, obs_dim, act_dim, hidden = 8, 12, 4, 32

    key = jax.random.PRNGKey(0)
    k_obs, k_act, k_par = jax.random.split(key, 3)
    obs = jax.random.normal(k_obs, (batch, obs_dim), jnp.float32)
    action = jax.random.normal(k_act, (batch, act_dim), jnp.float32)
    params = init_params(k_par, obs_dim, act_dim, hidden, out_dim=obs_dim)

    ref = reference_forward(obs, action, params)

    # f32 compute path: should match the reference tightly.
    fwd_f32 = jax.jit(functools.partial(dynamics_network_forward,
                                        compute_dtype=jnp.float32))
    out_f32 = jax.block_until_ready(fwd_f32(obs, action, params))
    assert out_f32.shape == (batch, obs_dim)
    assert jnp.allclose(out_f32, ref, atol=1e-4, rtol=1e-4), \
        "Pallas f32 output mismatch vs reference"

    # bf16 MXU-operand path (fast path on v6e/v7x): looser tolerance.
    fwd_bf16 = jax.jit(functools.partial(dynamics_network_forward,
                                         compute_dtype=jnp.bfloat16))
    out_bf16 = jax.block_until_ready(fwd_bf16(obs, action, params))
    assert out_bf16.shape == (batch, obs_dim)
    assert jnp.allclose(out_bf16, ref, atol=5e-2, rtol=5e-2), \
        "Pallas bf16 output mismatch vs reference"

    # Larger, non-aligned batch to exercise the batch grid (>1 tile) + padding.
    batch2 = 300
    k_obs2, k_act2 = jax.random.split(jax.random.PRNGKey(1))
    obs2 = jax.random.normal(k_obs2, (batch2, obs_dim), jnp.float32)
    act2 = jax.random.normal(k_act2, (batch2, act_dim), jnp.float32)
    fwd_grid = jax.jit(functools.partial(dynamics_network_forward,
                                         compute_dtype=jnp.float32,
                                         max_tile_b=128))
    out2 = jax.block_until_ready(fwd_grid(obs2, act2, params))
    ref2 = reference_forward(obs2, act2, params)
    assert out2.shape == (batch2, obs_dim)
    assert jnp.allclose(out2, ref2, atol=1e-4, rtol=1e-4), \
        "Pallas batched-grid output mismatch vs reference"

    print("KERNEL_OK")
</pallas_src>

<mosaic_0001>
module attributes {stable_mosaic.version = 11 : i64} {
  func.func @dynamics_mlp_kernel(%arg0: i32, %arg1: memref<8x16xf32, #tpu.memory_space<vmem>>, %arg2: memref<16x128xf32, #tpu.memory_space<vmem>>, %arg3: memref<1x128xf32, #tpu.memory_space<vmem>>, %arg4: memref<128x128xf32, #tpu.memory_space<vmem>>, %arg5: memref<1x128xf32, #tpu.memory_space<vmem>>, %arg6: memref<128x128xf32, #tpu.memory_space<vmem>>, %arg7: memref<1x128xf32, #tpu.memory_space<vmem>>, %arg8: memref<8x128xf32, #tpu.memory_space<vmem>>) attributes {dimension_semantics = [#tpu.dimension_semantics<parallel>], iteration_bounds = array<i64: 1>, scalar_prefetch = 0 : i64, scratch_operands = 0 : i64, tpu.core_type = #tpu.core_type<tc>, window_params = [{transform_indices = @transform_0, window_bounds = array<i64: 8, 16>}, {pipeline_mode = #tpu.pipeline_mode<synchronous>, transform_indices = @transform_1, window_bounds = array<i64: 16, 128>}, {pipeline_mode = #tpu.pipeline_mode<synchronous>, transform_indices = @transform_2, window_bounds = array<i64: 1, 128>}, {pipeline_mode = #tpu.pipeline_mode<synchronous>, transform_indices = @transform_3, window_bounds = array<i64: 128, 128>}, {pipeline_mode = #tpu.pipeline_mode<synchronous>, transform_indices = @transform_4, window_bounds = array<i64: 1, 128>}, {pipeline_mode = #tpu.pipeline_mode<synchronous>, transform_indices = @transform_5, window_bounds = array<i64: 128, 128>}, {pipeline_mode = #tpu.pipeline_mode<synchronous>, transform_indices = @transform_6, window_bounds = array<i64: 1, 128>}, {transform_indices = @transform_7, window_bounds = array<i64: 8, 128>}]} {
    %c0 = arith.constant 0 : index
    %c0_0 = arith.constant 0 : index
    %0 = vector.load %arg1[%c0, %c0_0] : memref<8x16xf32, #tpu.memory_space<vmem>>, vector<8x16xf32>
    %c0_1 = arith.constant 0 : index
    %c0_2 = arith.constant 0 : index
    %1 = vector.load %arg2[%c0_1, %c0_2] : memref<16x128xf32, #tpu.memory_space<vmem>>, vector<16x128xf32>
    %cst = arith.constant dense<0.000000e+00> : vector<8x128xf32>
    %2 = tpu.matmul %0, %1, %cst {dimension_numbers = #tpu.dot_dimension_numbers<[1], [0], [0], [1], [0, 0, 1, 1], [], []>} : vector<8x16xf32>, vector<16x128xf32>, vector<8x128xf32> -> vector<8x128xf32>
    %c0_3 = arith.constant 0 : index
    %c0_4 = arith.constant 0 : index
    %3 = vector.load %arg3[%c0_3, %c0_4] : memref<1x128xf32, #tpu.memory_space<vmem>>, vector<1x128xf32>
    %4 = vector.broadcast %3 : vector<1x128xf32> to vector<8x128xf32>
    %5 = arith.addf %2, %4 : vector<8x128xf32>
    %cst_5 = arith.constant 0.000000e+00 : f32
    %6 = vector.broadcast %cst_5 : f32 to vector<8x128xf32>
    %7 = arith.maximumf %5, %6 : vector<8x128xf32>
    %c0_6 = arith.constant 0 : index
    %c0_7 = arith.constant 0 : index
    %8 = vector.load %arg4[%c0_6, %c0_7] : memref<128x128xf32, #tpu.memory_space<vmem>>, vector<128x128xf32>
    %cst_8 = arith.constant dense<0.000000e+00> : vector<8x128xf32>
    %9 = tpu.matmul %7, %8, %cst_8 {dimension_numbers = #tpu.dot_dimension_numbers<[1], [0], [0], [1], [0, 0, 1, 1], [], []>} : vector<8x128xf32>, vector<128x128xf32>, vector<8x128xf32> -> vector<8x128xf32>
    %c0_9 = arith.constant 0 : index
    %c0_10 = arith.constant 0 : index
    %10 = vector.load %arg5[%c0_9, %c0_10] : memref<1x128xf32, #tpu.memory_space<vmem>>, vector<1x128xf32>
    %11 = vector.broadcast %10 : vector<1x128xf32> to vector<8x128xf32>
    %12 = arith.addf %9, %11 : vector<8x128xf32>
    %cst_11 = arith.constant 0.000000e+00 : f32
    %13 = vector.broadcast %cst_11 : f32 to vector<8x128xf32>
    %14 = arith.maximumf %12, %13 : vector<8x128xf32>
    %c0_12 = arith.constant 0 : index
    %c0_13 = arith.constant 0 : index
    %15 = vector.load %arg6[%c0_12, %c0_13] : memref<128x128xf32, #tpu.memory_space<vmem>>, vector<128x128xf32>
    %cst_14 = arith.constant dense<0.000000e+00> : vector<8x128xf32>
    %16 = tpu.matmul %14, %15, %cst_14 {dimension_numbers = #tpu.dot_dimension_numbers<[1], [0], [0], [1], [0, 0, 1, 1], [], []>} : vector<8x128xf32>, vector<128x128xf32>, vector<8x128xf32> -> vector<8x128xf32>
    %c0_15 = arith.constant 0 : index
    %c0_16 = arith.constant 0 : index
    %17 = vector.load %arg7[%c0_15, %c0_16] : memref<1x128xf32, #tpu.memory_space<vmem>>, vector<1x128xf32>
    %18 = vector.broadcast %17 : vector<1x128xf32> to vector<8x128xf32>
    %19 = arith.addf %16, %18 : vector<8x128xf32>
    %c0_17 = arith.constant 0 : index
    %c0_18 = arith.constant 0 : index
    %20 = vector.load %arg8[%c0_17, %c0_18] : memref<8x128xf32, #tpu.memory_space<vmem>>, vector<8x128xf32>
    tpu.vector_store %arg8[%c0_17, %c0_18], %19 {strides = array<i32>} : memref<8x128xf32, #tpu.memory_space<vmem>>, vector<8x128xf32>,
    return
  }
  func.func @transform_0(%arg0: i32) -> (i32, i32) {
    %c0_i32 = arith.constant 0 : i32
    %c0_i32_0 = arith.constant 0 : i32
    return %arg0, %c0_i32 : i32, i32
  }
  func.func @transform_1(%arg0: i32) -> (i32, i32) {
    %c0_i32 = arith.constant 0 : i32
    %c0_i32_0 = arith.constant 0 : i32
    %c0_i32_1 = arith.constant 0 : i32
    return %c0_i32, %c0_i32_0 : i32, i32
  }
  func.func @transform_2(%arg0: i32) -> (i32, i32) {
    %c0_i32 = arith.constant 0 : i32
    %c0_i32_0 = arith.constant 0 : i32
    %c0_i32_1 = arith.constant 0 : i32
    return %c0_i32, %c0_i32_0 : i32, i32
  }
  func.func @transform_3(%arg0: i32) -> (i32, i32) {
    %c0_i32 = arith.constant 0 : i32
    %c0_i32_0 = arith.constant 0 : i32
    %c0_i32_1 = arith.constant 0 : i32
    return %c0_i32, %c0_i32_0 : i32, i32
  }
  func.func @transform_4(%arg0: i32) -> (i32, i32) {
    %c0_i32 = arith.constant 0 : i32
    %c0_i32_0 = arith.constant 0 : i32
    %c0_i32_1 = arith.constant 0 : i32
    return %c0_i32, %c0_i32_0 : i32, i32
  }
  func.func @transform_5(%arg0: i32) -> (i32, i32) {
    %c0_i32 = arith.constant 0 : i32
    %c0_i32_0 = arith.constant 0 : i32
    %c0_i32_1 = arith.constant 0 : i32
    return %c0_i32, %c0_i32_0 : i32, i32
  }
  func.func @transform_6(%arg0: i32) -> (i32, i32) {
    %c0_i32 = arith.constant 0 : i32
    %c0_i32_0 = arith.constant 0 : i32
    %c0_i32_1 = arith.constant 0 : i32
    return %c0_i32, %c0_i32_0 : i32, i32
  }
  func.func @transform_7(%arg0: i32) -> (i32, i32) {
    %c0_i32 = arith.constant 0 : i32
    %c0_i32_0 = arith.constant 0 : i32
    return %arg0, %c0_i32 : i32, i32
  }
}

</mosaic_0001>

<bundles_post_ra>
// kernel: dynamics_network_forward.1
= control target key start
LH: loop header
LB: loop body
LE: loop exit
PB: predicated region body
PF: predicated region fallthrough
CT: control target
= control target key end

     0   :  { %v457_v1 = vmov 0.0   ;;  %vm458_vm0 = vmmov 0   ;;  %vm37_vm1 = vcmask 130048   ;;  %s657_s0 = inlined_call_operand.vmem [shape: f32[8,16], index: 0, kind: input, shape index: {}]   ;;  %s658_s1 = inlined_call_operand.vmem [shape: f32[16,128], index: 1, kind: input, shape index: {}]   ;;  %s659_s2 = inlined_call_operand.vmem [shape: f32[1,128], index: 2, kind: input, shape index: {}]   ;;  %s660_s3 = inlined_call_operand.vmem [shape: f32[128,128], index: 3, kind: input, shape index: {}]   ;;  %s661_s4 = inlined_call_operand.vmem [shape: f32[1,128], index: 4, kind: input, shape index: {}]   ;;  %s662_s5 = inlined_call_operand.vmem [shape: f32[128,128], index: 5, kind: input, shape index: {}]   ;;  %s663_s6 = inlined_call_operand.vmem [shape: f32[1,128], index: 6, kind: input, shape index: {}]   ;;  %s664_s7 = inlined_call_operand.hbm [shape: f32[8,128], index: 7, kind: output, shape index: {}]  }
   0x1   :  { %v29_v0 = vld [vmem:[%s658_s1 + $0x8] sm:$0xff]  ;;  %355 = vmatprep.subr.mxu0 %v457_v1  ;;  %v28_v2 = vld [vmem:[%s658_s1] sm:$0xff]  ;;  %359 = vmatprep.mubr.msk.f32.mxu0 %vm458_vm0, %v457_v1  ;;  %v127_v3 = vld [vmem:[%s660_s3 + $0x78] sm:$0xff] }
   0x2   :  { %356 = vmatpush3.msra.mxu0 %v29_v0  ;;  %v27_v4 = vld [vmem:[%s657_s0] sm:$0xff]  ;;  %362 = vmatprep.subr.mxu1 %v457_v1  ;;  %v126_v5 = vld [vmem:[%s660_s3 + $0x70] sm:$0xff]  ;;  %v125_v6 = vld [vmem:[%s660_s3 + $0x68] sm:$0xff] }
   0x3   :  { %357 = vmatprep.subr.mxu0 %v457_v1  ;;  %363 = vmatpush3.msra.mxu1 %v127_v3 }
   0x4   :  { %358 = vmatpush3.msra.mxu0 %v28_v2  ;;  %364 = vmatprep.subr.mxu1 %v457_v1 }
   0x5   :  { %360 = vmatmul.mubr.msk.f32.vlgmr.msra.gmra.mxu0 %vm37_vm1, %v27_v4  ;;  %365 = vmatpush3.msra.mxu1 %v126_v5 }
   0x6   :  { %12 = vsyncpa [#allocation3], 0  ;;  %366 = vmatprep.subr.mxu1 %v457_v1  ;;  %v124_v7 = vld [vmem:[%s660_s3 + $0x60] sm:$0xff]  ;;  %394 = vmatprep.mubr.msk.f32.mxu1 %vm458_vm0, %v457_v1  ;;  %v123_v8 = vld [vmem:[%s660_s3 + $0x58] sm:$0xff]  ;;  %s459_s22 = smov [#allocation2]  }
   0x7   :  { %367 = vmatpush3.msra.mxu1 %v125_v6  ;;  %397 = vmatprep.subr.mxu0 %v457_v1  ;;  %v122_v9 = vld [vmem:[%s660_s3 + $0x50] sm:$0xff]  ;;  %v121_v10 = vld [vmem:[%s660_s3 + $0x48] sm:$0xff]  ;;  %v120_v11 = vld [vmem:[%s660_s3 + $0x40] sm:$0xff]  ;;  %s306_s23 = sshll.u32 %s459_s22, 4  ;;  %s307_s23 = int_to_ptr.vmem [resolvable:$true] %s306_s23 }
   0x8   :  { %368 = vmatprep.subr.mxu1 %v457_v1  ;;  %429 = vmatprep.mubr.msk.f32.mxu0 %vm458_vm0, %v457_v1  ;;  %v119_v12 = vld [vmem:[%s660_s3 + $0x38] sm:$0xff]  ;;  %v118_v13 = vld [vmem:[%s660_s3 + $0x30] sm:$0xff]  ;;  %v117_v14 = vld [vmem:[%s660_s3 + $0x28] sm:$0xff]  ;;  %p440_p1 = scmp.lt.s32.totalorder %s307_s23, %s307_s23 }
   0x9   :  { %369 = vmatpush3.msra.mxu1 %v124_v7  ;;  %v116_v15 = vld [vmem:[%s660_s3 + $0x20] sm:$0xff]  ;;  %v115_v16 = vld [vmem:[%s660_s3 + $0x18] sm:$0xff]  ;;  %v114_v17 = vld [vmem:[%s660_s3 + $0x10] sm:$0xff] }
   0xa   :  { %370 = vmatprep.subr.mxu1 %v457_v1  ;;  %v113_v18 = vld [vmem:[%s660_s3 + $0x8] sm:$0xff]  ;;  %v112_v19 = vld [vmem:[%s660_s3] sm:$0xff]  ;;  %v221_v20 = vld [vmem:[%s662_s5 + $0x78] sm:$0xff] }
   0xb   :  { %371 = vmatpush3.msra.mxu1 %v123_v8  ;;  %v220_v21 = vld [vmem:[%s662_s5 + $0x70] sm:$0xff]  ;;  %398 = vmatpush3.msra.mxu0 %v221_v20  ;;  %v219_v22 = vld [vmem:[%s662_s5 + $0x68] sm:$0xff]  ;;  %v218_v23 = vld [vmem:[%s662_s5 + $0x60] sm:$0xff] }
   0xc   :  { %372 = vmatprep.subr.mxu1 %v457_v1  ;;  %399 = vmatprep.subr.mxu0 %v457_v1  ;;  %v217_v24 = vld [vmem:[%s662_s5 + $0x58] sm:$0xff]  ;;  %v216_v25 = vld [vmem:[%s662_s5 + $0x50] sm:$0xff]  ;;  %v215_v26 = vld [vmem:[%s662_s5 + $0x48] sm:$0xff] }
   0xd   :  { %373 = vmatpush3.msra.mxu1 %v122_v9  ;;  %400 = vmatpush3.msra.mxu0 %v220_v21  ;;  %v214_v27 = vld [vmem:[%s662_s5 + $0x40] sm:$0xff]  ;;  %v213_v28 = vld [vmem:[%s662_s5 + $0x38] sm:$0xff]  ;;  %v212_v29 = vld [vmem:[%s662_s5 + $0x30] sm:$0xff] }
   0xe   :  { %374 = vmatprep.subr.mxu1 %v457_v1  ;;  %401 = vmatprep.subr.mxu0 %v457_v1  ;;  %v211_v30 = vld [vmem:[%s662_s5 + $0x28] sm:$0xff]  ;;  %v210_v31 = vld [vmem:[%s662_s5 + $0x20] sm:$0xff]  ;;  %v209_v32 = vld [vmem:[%s662_s5 + $0x18] sm:$0xff] }
   0xf   :  { %375 = vmatpush3.msra.mxu1 %v121_v10  ;;  %402 = vmatpush3.msra.mxu0 %v219_v22  ;;  %v314_v33 = vld [vmem:[%s659_s2] ss:$0 sm:$0xff]  ;;  %v208_v38 = vld [vmem:[%s662_s5 + $0x10] sm:$0xff]  ;;  %v207_v39 = vld [vmem:[%s662_s5 + $0x8] sm:$0xff] }
  0x10   :  { %376 = vmatprep.subr.mxu1 %v457_v1  ;;  %403 = vmatprep.subr.mxu0 %v457_v1  ;;  %v206_v40 = vld [vmem:[%s662_s5] sm:$0xff]  ;;  %s435_s5 = scalar_lea.vmem %s307_s23, 128 }
  0x11   :  { %377 = vmatpush3.msra.mxu1 %v120_v11  ;;  %404 = vmatpush3.msra.mxu0 %v218_v23  ;;  %v316_v41 = vld [vmem:[%s661_s4] ss:$0 sm:$0xff]  ;;  %p436_p0 = scmp.ne.s32.totalorder %s307_s23, %s435_s5  ;;  %p441_p2 = scmp.lt.s32.totalorder %s435_s5, %s435_s5 }
  0x12   :  { %378 = vmatprep.subr.mxu1 %v457_v1  ;;  %405 = vmatprep.subr.mxu0 %v457_v1  ;;  %v317_v46 = vld [vmem:[%s663_s6] ss:$0 sm:$0xff] }
  0x13   :  { %379 = vmatpush3.msra.mxu1 %v119_v12  ;;  %406 = vmatpush3.msra.mxu0 %v217_v24  ;;  %p442_p3 = por %p441_p2, %p440_p1 }
  0x14   :  { %380 = vmatprep.subr.mxu1 %v457_v1  ;;  %407 = vmatprep.subr.mxu0 %v457_v1 }
  0x15   :  { %381 = vmatpush3.msra.mxu1 %v118_v13  ;;  %408 = vmatpush3.msra.mxu0 %v216_v25  ;;  %p443_p4 = pnand %p442_p3, %p436_p0 }
  0x16   :  { %382 = vmatprep.subr.mxu1 %v457_v1  ;;  %409 = vmatprep.subr.mxu0 %v457_v1 }
  0x17   :  { %383 = vmatpush3.msra.mxu1 %v117_v14  ;;  %410 = vmatpush3.msra.mxu0 %v215_v26 }
  0x18   :  { %384 = vmatprep.subr.mxu1 %v457_v1  ;;  %411 = vmatprep.subr.mxu0 %v457_v1 }
  0x19   :  { %385 = vmatpush3.msra.mxu1 %v116_v15  ;;  %412 = vmatpush3.msra.mxu0 %v214_v27 }
  0x1a   :  { %386 = vmatprep.subr.mxu1 %v457_v1  ;;  %413 = vmatprep.subr.mxu0 %v457_v1 }
  0x1b   :  { %387 = vmatpush3.msra.mxu1 %v115_v16  ;;  %414 = vmatpush3.msra.mxu0 %v213_v28 }
  0x1c   :  { %388 = vmatprep.subr.mxu1 %v457_v1  ;;  %415 = vmatprep.subr.mxu0 %v457_v1 }
  0x1d   :  { %389 = vmatpush3.msra.mxu1 %v114_v17  ;;  %416 = vmatpush3.msra.mxu0 %v212_v29 }
  0x1e   :  { %390 = vmatprep.subr.mxu1 %v457_v1  ;;  %417 = vmatprep.subr.mxu0 %v457_v1 }
  0x1f   :  { %391 = vmatpush3.msra.mxu1 %v113_v18  ;;  %418 = vmatpush3.msra.mxu0 %v211_v30 }
  0x20   :  { %392 = vmatprep.subr.mxu1 %v457_v1  ;;  %419 = vmatprep.subr.mxu0 %v457_v1 }
  0x21   :  { %393 = vmatpush3.msra.mxu1 %v112_v19  ;;  %420 = vmatpush3.msra.mxu0 %v210_v31 }
  0x22   :  { %421 = vmatprep.subr.mxu0 %v457_v1 }
  0x23   :  { %422 = vmatpush3.msra.mxu0 %v209_v32 }
  0x24   :  { %423 = vmatprep.subr.mxu0 %v457_v1 }
  0x25   :  { %424 = vmatpush3.msra.mxu0 %v208_v38 }
  0x26   :  { %425 = vmatprep.subr.mxu0 %v457_v1 }
  0x27   :  { %426 = vmatpush3.msra.mxu0 %v207_v39 }
  0x28   :  { %427 = vmatprep.subr.mxu0 %v457_v1 }
  0x29   :  { %428 = vmatpush3.msra.mxu0 %v206_v40 }
  0xc5   :  { %v107_v34 = vpop.f32.mrf.mxu0 }
  0xc6   :  { %v108_v35 = vadd.f32 %v314_v33, %v107_v34 }
  0xc7   :  { %v361_v36 = vpop.f32.mrf.mxu0 }
  0xc8   :  { %v111_v37 = vmax.f32 %v108_v35, 0.0 }
  0xca   :  { %395 = vmatmul.mubr.f32.vlgmr.msra.gmra.mxu1 %v111_v37 }
 0x18a   :  { %v201_v42 = vpop.f32.mrf.mxu1 }
 0x18b   :  { %v202_v43 = vadd.f32 %v316_v41, %v201_v42 }
 0x18c   :  { %v396_v44 = vpop.f32.mrf.mxu1 }
 0x18d   :  { %v205_v45 = vmax.f32 %v202_v43, 0.0 }
 0x18f   :  { %430 = vmatmul.mubr.f32.vlgmr.msra.gmra.mxu0 %v205_v45 }
 0x24f   :  { %v295_v47 = vpop.f32.mrf.mxu0 }
 0x250   :  { %v296_v48 = vadd.f32 %v317_v46, %v295_v47 }
 0x251   :  { %v431_v49 = vpop.f32.mrf.mxu0 }
 0x252   :  { %299 = vst [vmem:[#allocation2] sm:$0xff] %v296_v48 }
 0x253   :  { %446 = shalt.err (!%p443_p4)
}
 0x254   :  { %309 = dma.vmem_to_hbm [thread:$0]  %s307_s23, 128, %s664_s7, [#allocation3]  }
 0x255   :  { %455 = dma.done.wait [#allocation3], 128  }
 0x256   :  { %456 = vsyncadd [#allocation3], 4294967168 }
 0x257   :  { %313 = vsyncpa [#allocation3], 1 }

</bundles_post_ra>
